<compile_context>
chip_gen: v6e
topology: v6e:2x2x1
jax: 0.10.0
libtpu: 0.0.40
codegen_flags: <defaults>
</compile_context>

<pallas_src>
import functools
import math

import jax
import jax.numpy as jnp
from jax.experimental import pallas as pl
from jax.experimental.pallas import tpu as pltpu


def _round_up(x, m):
    return ((x + m - 1) // m) * m


def _swap_halves(x, half):
    """Swap the two lane halves of a (rows, 2*half) array."""
    if (2 * half) % 128 == 0:
        return pltpu.roll(x, shift=half, axis=1)          # XLU lane rotate
    return jnp.concatenate([x[:, half:], x[:, :half]], axis=-1)


# ----------------------------------------------------------------------------
# Kernel
# ----------------------------------------------------------------------------
def _hybrid_kernel(F, L,
                   x_ref, wp1_ref, wp2_ref, wqkv_ref, m2_ref,
                   wf1_ref, wf2_ref, wf3_ref, cvec_ref, out_ref):
    f32 = jnp.float32
    bf16 = jnp.bfloat16
    F2 = 2 * F

    X = x_ref[...]                                      # (tb, Wxp)  bf16
    tb = X.shape[0]
    ei = X[:, 0:F2]                                     # [ue | ie]       bf16
    xllm = X[:, F2:F2 + 2 * L]                          # [ullm | illm]   bf16
    rb = X[:, F2 + 2 * L:F2 + 2 * L + 1].astype(f32)    # user+item bias (tb,1)

    C = cvec_ref[...]                                   # (8, 6F) f32 bias table

    # --- LLM projection MLPs, user|item lane-packed, eval-BN folded ----------
    h = jnp.dot(xllm, wp1_ref[...], preferred_element_type=f32) + C[0:1, 0:F2]
    h = jnp.maximum(h, 0.0)                             # ReLU (Dropout = identity)
    proj = jnp.dot(h.astype(bf16), wp2_ref[...],
                   preferred_element_type=f32) + C[1:2, 0:F2]   # [up | ip] f32

    # --- fused QKV projection for both context rows --------------------------
    X2 = jnp.concatenate([ei, proj.astype(bf16)], axis=0)        # (2tb, 2F)
    qkv = jnp.dot(X2, wqkv_ref[...], preferred_element_type=f32) + C[2:3, 0:6 * F]
    Q = qkv[:, 0:F2]        # rows 0:tb = [q_ue|q_ie], rows tb:2tb = [q_up|q_ip]
    K = qkv[:, F2:2 * F2]
    V = qkv[:, 2 * F2:3 * F2]

    # --- delta-form 2-way softmax scores (1/sqrt(Dh) folded into Wq) ---------
    # swap user/item lane halves so each query sees the other side's keys
    kdiff = _swap_halves(K[0:tb] - K[tb:2 * tb], F)     # [k_ie-k_ip | k_ue-k_up]
    delta = Q * jnp.concatenate([kdiff, kdiff], axis=0)            # (2tb, 2F)
    gap = jnp.dot(delta.astype(bf16), m2_ref[...], preferred_element_type=f32)
    # stable sigmoid(gap): weight on key position 0, already broadcast per head
    z = jnp.exp(-jnp.abs(gap))
    r = pl.reciprocal(1.0 + z, approx=True)
    w0 = jnp.where(gap >= 0.0, r, z * r)                           # (2tb, 2F)

    # --- value blend with both query positions pre-combined ------------------
    w0sum = w0[0:tb] + w0[tb:2 * tb]                    # [a_ue+a_up | a_ie+a_ip]
    vdiff = _swap_halves(V[0:tb] - V[tb:2 * tb], F)     # [v_ie-v_ip | v_ue-v_up]
    vsec = _swap_halves(V[tb:2 * tb], F)                # [v_ip      | v_up     ]
    ctx = 2.0 * vsec + w0sum * vdiff                    # [ctx_sum_u | ctx_sum_i]

    # --- fusion MLP (Wo, 0.5 mean, 1.5 cf scale, BN, global bias folded) -----
    ei32 = ei.astype(f32)
    cf = ei32[:, 0:F] * ei32[:, F:F2]
    llm = proj[:, 0:F] * proj[:, F:F2]
    comb = jnp.concatenate([cf, llm, ctx], axis=-1).astype(bf16)   # (tb, 4F)
    h = jnp.dot(comb, wf1_ref[...], preferred_element_type=f32) + C[3:4, 0:F2]
    h = jnp.maximum(h, 0.0)
    h = jnp.dot(h.astype(bf16), wf2_ref[...], preferred_element_type=f32) + C[4:5, 0:F]
    h = jnp.maximum(h, 0.0)
    pred = jnp.dot(h.astype(bf16), wf3_ref[...], preferred_element_type=f32) + C[5:6, 0:1]

    out_ref[...] = pred + rb
    # TODO(synk): optional lane-dense (1, tb) output layout (XLU transpose)
    # once verified on all target generations; (tb, 1) writeback is tiny here.


# ----------------------------------------------------------------------------
# Parameter construction
# ----------------------------------------------------------------------------
def init_params(key, n_users, n_items, n_factors, llm_dim, num_heads):
    F, L = n_factors, llm_dim
    assert F % num_heads == 0, "n_factors must be divisible by num_heads"
    ks = iter(jax.random.split(key, 64))

    def xavier(shape):
        fan_in, fan_out = shape
        lim = math.sqrt(6.0 / (fan_in + fan_out))
        return jax.random.uniform(next(ks), shape, jnp.float32, -lim, lim)

    def small(shape, std=0.01):
        return std * jax.random.normal(next(ks), shape, jnp.float32)

    def bn_fold(n):
        # deterministic pseudo running-stats folded to scale/shift (eval BN)
        scale = 1.0 + 0.1 * jax.random.normal(next(ks), (1, n), jnp.float32)
        shift = 0.1 * jax.random.normal(next(ks), (1, n), jnp.float32)
        return scale, shift

    p = {}
    p["user_factors"] = small((n_users, F))
    p["item_factors"] = small((n_items, F))
    p["user_biases"] = small((n_users, 1))
    p["item_biases"] = small((n_items, 1))
    p["global_bias"] = small((1,))

    for tag in ("up", "ip"):  # llm_user_projection / llm_item_projection
        p[f"w_{tag}1"] = xavier((L, F))
        p[f"b_{tag}1"] = small((1, F))
        p[f"s_{tag}1"], p[f"t_{tag}1"] = bn_fold(F)
        p[f"w_{tag}2"] = xavier((F, F))
        p[f"b_{tag}2"] = small((1, F))
        p[f"s_{tag}2"], p[f"t_{tag}2"] = bn_fold(F)

    # shared MultiheadAttention params (stored as x @ W form)
    for tag in ("q", "k", "v", "o"):
        p[f"w{tag}"] = xavier((F, F))
        p[f"b{tag}"] = small((1, F))

    # fusion
    p["w_f1"] = xavier((4 * F, 2 * F))
    p["b_f1"] = small((1, 2 * F))
    p["s_f1"], p["t_f1"] = bn_fold(2 * F)
    p["w_f2"] = xavier((2 * F, F))
    p["b_f2"] = small((1, F))
    p["s_f2"], p["t_f2"] = bn_fold(F)
    p["w_f3"] = xavier((F, 1))
    p["b_f3"] = small((1, 1))
    return p


def pack_params(p, num_heads):
    """Fold BN / scales / Wo / biases, lane-pack user|item, cast to bf16.

    Call ONCE at model-init time; the result is what the forward pass consumes.
    """
    F = p["wq"].shape[0]
    H = num_heads
    assert F % H == 0
    Dh = F // H
    f32, bf16 = jnp.float32, jnp.bfloat16

    def fold(w, b, s, t):
        # (x @ w + b) * s + t == x @ (w * s) + (b * s + t)
        return w * s, b * s + t

    def blockdiag(a, b):
        ra, ca = a.shape
        rb, cb = b.shape
        out = jnp.zeros((ra + rb, ca + cb), f32)
        return out.at[:ra, :ca].set(a).at[ra:, ca:].set(b)

    # LLM projection layers, user|item block-diagonal, eval-BN folded
    wu1, cu1 = fold(p["w_up1"], p["b_up1"], p["s_up1"], p["t_up1"])
    wi1, ci1 = fold(p["w_ip1"], p["b_ip1"], p["s_ip1"], p["t_ip1"])
    wp1 = blockdiag(wu1, wi1)                                   # (2L, 2F)
    cp1 = jnp.concatenate([cu1, ci1], axis=-1)

    wu2, cu2 = fold(p["w_up2"], p["b_up2"], p["s_up2"], p["t_up2"])
    wi2, ci2 = fold(p["w_ip2"], p["b_ip2"], p["s_ip2"], p["t_ip2"])
    wp2 = blockdiag(wu2, wi2)                                   # (2F, 2F)
    cp2 = jnp.concatenate([cu2, ci2], axis=-1)

    # fused QKV on [user|item] lane halves, 1/sqrt(Dh) folded into Wq / bq
    sc = 1.0 / math.sqrt(Dh)
    wq_s = p["wq"] * sc
    wqkv = jnp.concatenate([blockdiag(wq_s, wq_s),
                            blockdiag(p["wk"], p["wk"]),
                            blockdiag(p["wv"], p["wv"])], axis=1)   # (2F, 6F)
    bq_s = p["bq"] * sc
    bqkv = jnp.concatenate([bq_s, bq_s, p["bk"], p["bk"],
                            p["bv"], p["bv"]], axis=-1)             # (1, 6F)

    # precomposed head-membership mask (per-head sum then broadcast), block-diag
    head = jnp.arange(F) // Dh
    M2 = (head[:, None] == head[None, :]).astype(f32)               # (F, F)
    m2 = blockdiag(M2, M2)                                          # (2F, 2F)

    # fusion layer 1: BN folded, 1.5 cf scale folded into rows 0:F, and the
    # attention out-projection (with its 0.5 query-position mean) folded into
    # the att_u / att_i row blocks; bo folded into the bias.
    wf1, cf1 = fold(p["w_f1"], p["b_f1"], p["s_f1"], p["t_f1"])
    wo = 0.5 * p["wo"]
    wf1p = jnp.concatenate([1.5 * wf1[:F], wf1[F:2 * F],
                            wo @ wf1[2 * F:3 * F],
                            wo @ wf1[3 * F:4 * F]], axis=0)          # (4F, 2F)
    cf1p = cf1 + p["bo"] @ wf1[2 * F:3 * F] + p["bo"] @ wf1[3 * F:4 * F]

    wf2, cf2 = fold(p["w_f2"], p["b_f2"], p["s_f2"], p["t_f2"])
    wf3 = p["w_f3"]
    cf3 = p["b_f3"] + p["global_bias"].reshape(1, 1)  # global bias folded in

    # f32 bias/shift table, one row per fused layer (lane width = 6F)
    cvec = jnp.zeros((8, 6 * F), f32)
    cvec = cvec.at[0, :2 * F].set(cp1[0])
    cvec = cvec.at[1, :2 * F].set(cp2[0])
    cvec = cvec.at[2, :6 * F].set(bqkv[0])
    cvec = cvec.at[3, :2 * F].set(cf1p[0])
    cvec = cvec.at[4, :F].set(cf2[0])
    cvec = cvec.at[5, :1].set(cf3[0])

    return dict(
        wp1=wp1.astype(bf16), wp2=wp2.astype(bf16), wqkv=wqkv.astype(bf16),
        m2=m2.astype(bf16), wf1=wf1p.astype(bf16), wf2=wf2.astype(bf16),
        wf3=wf3.astype(bf16), cvec=cvec,
        user_factors=p["user_factors"], item_factors=p["item_factors"],
        user_biases=p["user_biases"], item_biases=p["item_biases"])


# ----------------------------------------------------------------------------
# Wrapper (jit-able; packing already done)
# ----------------------------------------------------------------------------
def hybrid_net_forward(packed, user_ids, item_ids, user_llm, item_llm,
                       block_b=512):
    f32 = jnp.float32

    # embedding gathers = plain-JAX glue
    ue = packed["user_factors"][user_ids]
    ie = packed["item_factors"][item_ids]
    rb = packed["user_biases"][user_ids] + packed["item_biases"][item_ids]

    B, F = ue.shape
    L = user_llm.shape[-1]

    # packed activation slab: [ue | ie | user_llm | item_llm | rb | pad->128k]
    x_act = jnp.concatenate([ue, ie, user_llm, item_llm, rb], axis=-1).astype(f32)
    Wx = x_act.shape[-1]
    Wxp = _round_up(Wx, 128)

    # batch tile: multiple of 8; aim for >= 2 grid steps so both v7x TCs are used
    tb = min(block_b, _round_up(max(1, (B + 1) // 2), 8))
    Bp = _round_up(B, tb)
    x_act = jnp.pad(x_act, ((0, Bp - B), (0, Wxp - Wx))).astype(jnp.bfloat16)

    weights = (packed["wp1"], packed["wp2"], packed["wqkv"], packed["m2"],
               packed["wf1"], packed["wf2"], packed["wf3"], packed["cvec"])

    def resident(w):
        nd = w.ndim
        return pl.BlockSpec(w.shape, lambda i, _nd=nd: (0,) * _nd)

    in_specs = ([pl.BlockSpec((tb, Wxp), lambda i: (i, 0))]
                + [resident(w) for w in weights])

    out = pl.pallas_call(
        functools.partial(_hybrid_kernel, F, L),
        out_shape=jax.ShapeDtypeStruct((Bp, 1), f32),
        grid=(Bp // tb,),
        in_specs=in_specs,
        out_specs=pl.BlockSpec((tb, 1), lambda i: (i, 0)),
        compiler_params=pltpu.CompilerParams(
            dimension_semantics=("parallel",)),
    )(x_act, *weights)
    return out[:B, 0]


# ----------------------------------------------------------------------------
# Pure-JAX reference (mirrors the PyTorch forward in eval mode)
# ----------------------------------------------------------------------------
def reference_forward(p, user_ids, item_ids, ul, il, num_heads):
    ue = p["user_factors"][user_ids]
    ie = p["item_factors"][item_ids]
    ub = p["user_biases"][user_ids][:, 0]
    ib = p["item_biases"][item_ids][:, 0]

    def proj(x, w1, b1, s1, t1, w2, b2, s2, t2):
        h = x @ w1 + b1
        h = h * s1 + t1
        h = jnp.maximum(h, 0.0)
        h = h @ w2 + b2
        return h * s2 + t2

    up = proj(ul, p["w_up1"], p["b_up1"], p["s_up1"], p["t_up1"],
              p["w_up2"], p["b_up2"], p["s_up2"], p["t_up2"])
    ip = proj(il, p["w_ip1"], p["b_ip1"], p["s_ip1"], p["t_ip1"],
              p["w_ip2"], p["b_ip2"], p["s_ip2"], p["t_ip2"])

    user_ctx = jnp.stack([ue, up], axis=1)   # (B, 2, F)
    item_ctx = jnp.stack([ie, ip], axis=1)

    def mha(q, kv):
        B, S, F = q.shape
        H = num_heads
        Dh = F // H
        qp = (q @ p["wq"] + p["bq"][0]).reshape(B, S, H, Dh).transpose(0, 2, 1, 3)
        kp = (kv @ p["wk"] + p["bk"][0]).reshape(B, S, H, Dh).transpose(0, 2, 1, 3)
        vp = (kv @ p["wv"] + p["bv"][0]).reshape(B, S, H, Dh).transpose(0, 2, 1, 3)
        sc = jnp.einsum("bhqd,bhkd->bhqk", qp, kp) / math.sqrt(Dh)
        a = jax.nn.softmax(sc, axis=-1)
        ctx = jnp.einsum("bhqk,bhkd->bhqd", a, vp).transpose(0, 2, 1, 3).reshape(B, S, F)
        return ctx @ p["wo"] + p["bo"][0]

    att_u = mha(user_ctx, item_ctx).mean(axis=1)
    att_i = mha(item_ctx, user_ctx).mean(axis=1)

    cf = ue * ie * 1.5
    llm = up * ip
    comb = jnp.concatenate([cf, llm, att_u, att_i], axis=-1)
    h = comb @ p["w_f1"] + p["b_f1"]
    h = h * p["s_f1"] + p["t_f1"]
    h = jnp.maximum(h, 0.0)
    h = h @ p["w_f2"] + p["b_f2"]
    h = h * p["s_f2"] + p["t_f2"]
    h = jnp.maximum(h, 0.0)
    pred = (h @ p["w_f3"] + p["b_f3"])[:, 0]
    return pred + ub + ib + p["global_bias"][0]


# ----------------------------------------------------------------------------
if __name__ == "__main__":
    B = 8
    n_users, n_items = 16, 16
    n_factors, llm_dim, num_heads = 64, 32, 4

    key = jax.random.PRNGKey(0)
    k_param, k_data = jax.random.split(key)
    params = init_params(k_param, n_users, n_items, n_factors, llm_dim, num_heads)
    packed = pack_params(params, num_heads)          # pack ONCE at init time

    k1, k2, k3, k4 = jax.random.split(k_data, 4)
    user_ids = jax.random.randint(k1, (B,), 0, n_users)
    item_ids = jax.random.randint(k2, (B,), 0, n_items)
    user_llm = jax.random.normal(k3, (B, llm_dim), jnp.float32)
    item_llm = jax.random.normal(k4, (B, llm_dim), jnp.float32)

    fwd = jax.jit(hybrid_net_forward)
    out = fwd(packed, user_ids, item_ids, user_llm, item_llm)
    out = jax.block_until_ready(out)

    ref = reference_forward(params, user_ids, item_ids, user_llm, item_llm, num_heads)
    err = float(jnp.max(jnp.abs(out - ref)))
    assert out.shape == (B,), out.shape
    # bf16 operand path + approx EUP reciprocal => relaxed (but still tight) tol
    assert err < 5e-2, f"kernel/reference mismatch: max abs err = {err}"
    print("KERNEL_OK")
</pallas_src>

<mosaic_0001>
module attributes {stable_mosaic.version = 11 : i64} {
  func.func @_hybrid_kernel(%arg0: i32, %arg1: memref<8x256xbf16, #tpu.memory_space<vmem>>, %arg2: memref<64x128xbf16, #tpu.memory_space<vmem>>, %arg3: memref<128x128xbf16, #tpu.memory_space<vmem>>, %arg4: memref<128x384xbf16, #tpu.memory_space<vmem>>, %arg5: memref<128x128xbf16, #tpu.memory_space<vmem>>, %arg6: memref<256x128xbf16, #tpu.memory_space<vmem>>, %arg7: memref<128x64xbf16, #tpu.memory_space<vmem>>, %arg8: memref<64x1xbf16, #tpu.memory_space<vmem>>, %arg9: memref<8x384xf32, #tpu.memory_space<vmem>>, %arg10: memref<8x1xf32, #tpu.memory_space<vmem>>) attributes {dimension_semantics = [#tpu.dimension_semantics<parallel>], iteration_bounds = array<i64: 1>, scalar_prefetch = 0 : i64, scratch_operands = 0 : i64, tpu.core_type = #tpu.core_type<tc>, window_params = [{transform_indices = @transform_0, window_bounds = array<i64: 8, 256>}, {pipeline_mode = #tpu.pipeline_mode<synchronous>, transform_indices = @transform_1, window_bounds = array<i64: 64, 128>}, {pipeline_mode = #tpu.pipeline_mode<synchronous>, transform_indices = @transform_2, window_bounds = array<i64: 128, 128>}, {pipeline_mode = #tpu.pipeline_mode<synchronous>, transform_indices = @transform_3, window_bounds = array<i64: 128, 384>}, {pipeline_mode = #tpu.pipeline_mode<synchronous>, transform_indices = @transform_4, window_bounds = array<i64: 128, 128>}, {pipeline_mode = #tpu.pipeline_mode<synchronous>, transform_indices = @transform_5, window_bounds = array<i64: 256, 128>}, {pipeline_mode = #tpu.pipeline_mode<synchronous>, transform_indices = @transform_6, window_bounds = array<i64: 128, 64>}, {pipeline_mode = #tpu.pipeline_mode<synchronous>, transform_indices = @transform_7, window_bounds = array<i64: 64, 1>}, {pipeline_mode = #tpu.pipeline_mode<synchronous>, transform_indices = @transform_8, window_bounds = array<i64: 8, 384>}, {transform_indices = @transform_9, window_bounds = array<i64: 8, 1>}]} {
    %c0 = arith.constant 0 : index
    %c0_0 = arith.constant 0 : index
    %0 = vector.load %arg1[%c0, %c0_0] : memref<8x256xbf16, #tpu.memory_space<vmem>>, vector<8x256xbf16>
    %1 = vector.extract_strided_slice %0 {offsets = [0, 0], sizes = [8, 128], strides = [1, 1]} : vector<8x256xbf16> to vector<8x128xbf16>
    %2 = vector.extract_strided_slice %0 {offsets = [0, 128], sizes = [8, 64], strides = [1, 1]} : vector<8x256xbf16> to vector<8x64xbf16>
    %3 = vector.extract_strided_slice %0 {offsets = [0, 192], sizes = [8, 1], strides = [1, 1]} : vector<8x256xbf16> to vector<8x1xbf16>
    %4 = arith.extf %3 : vector<8x1xbf16> to vector<8x1xf32>
    %c0_1 = arith.constant 0 : index
    %c0_2 = arith.constant 0 : index
    %5 = vector.load %arg9[%c0_1, %c0_2] : memref<8x384xf32, #tpu.memory_space<vmem>>, vector<8x384xf32>
    %c0_3 = arith.constant 0 : index
    %c0_4 = arith.constant 0 : index
    %6 = vector.load %arg2[%c0_3, %c0_4] : memref<64x128xbf16, #tpu.memory_space<vmem>>, vector<64x128xbf16>
    %cst = arith.constant dense<0.000000e+00> : vector<8x128xf32>
    %7 = tpu.matmul %2, %6, %cst {dimension_numbers = #tpu.dot_dimension_numbers<[1], [0], [0], [1], [0, 0, 1, 1], [], []>} : vector<8x64xbf16>, vector<64x128xbf16>, vector<8x128xf32> -> vector<8x128xf32>
    %8 = vector.extract_strided_slice %5 {offsets = [0, 0], sizes = [1, 128], strides = [1, 1]} : vector<8x384xf32> to vector<1x128xf32>
    %9 = vector.broadcast %8 : vector<1x128xf32> to vector<8x128xf32>
    %10 = arith.addf %7, %9 : vector<8x128xf32>
    %cst_5 = arith.constant 0.000000e+00 : f32
    %11 = vector.broadcast %cst_5 : f32 to vector<8x128xf32>
    %12 = arith.maximumf %10, %11 : vector<8x128xf32>
    %13 = arith.truncf %12 : vector<8x128xf32> to vector<8x128xbf16>
    %c0_6 = arith.constant 0 : index
    %c0_7 = arith.constant 0 : index
    %14 = vector.load %arg3[%c0_6, %c0_7] : memref<128x128xbf16, #tpu.memory_space<vmem>>, vector<128x128xbf16>
    %cst_8 = arith.constant dense<0.000000e+00> : vector<8x128xf32>
    %15 = tpu.matmul %13, %14, %cst_8 {dimension_numbers = #tpu.dot_dimension_numbers<[1], [0], [0], [1], [0, 0, 1, 1], [], []>} : vector<8x128xbf16>, vector<128x128xbf16>, vector<8x128xf32> -> vector<8x128xf32>
    %16 = vector.extract_strided_slice %5 {offsets = [1, 0], sizes = [1, 128], strides = [1, 1]} : vector<8x384xf32> to vector<1x128xf32>
    %17 = vector.broadcast %16 : vector<1x128xf32> to vector<8x128xf32>
    %18 = arith.addf %15, %17 : vector<8x128xf32>
    %19 = arith.truncf %18 : vector<8x128xf32> to vector<8x128xbf16>
    %20 = tpu.concatenate %1, %19 in 0 : vector<8x128xbf16>, vector<8x128xbf16> -> vector<16x128xbf16>
    %c0_9 = arith.constant 0 : index
    %c0_10 = arith.constant 0 : index
    %21 = vector.load %arg4[%c0_9, %c0_10] : memref<128x384xbf16, #tpu.memory_space<vmem>>, vector<128x384xbf16>
    %cst_11 = arith.constant dense<0.000000e+00> : vector<16x384xf32>
    %22 = tpu.matmul %20, %21, %cst_11 {dimension_numbers = #tpu.dot_dimension_numbers<[1], [0], [0], [1], [0, 0, 1, 1], [], []>} : vector<16x128xbf16>, vector<128x384xbf16>, vector<16x384xf32> -> vector<16x384xf32>
    %23 = vector.extract_strided_slice %5 {offsets = [2, 0], sizes = [1, 384], strides = [1, 1]} : vector<8x384xf32> to vector<1x384xf32>
    %24 = vector.broadcast %23 : vector<1x384xf32> to vector<16x384xf32>
    %25 = arith.addf %22, %24 : vector<16x384xf32>
    %26 = vector.extract_strided_slice %25 {offsets = [0, 0], sizes = [16, 128], strides = [1, 1]} : vector<16x384xf32> to vector<16x128xf32>
    %27 = vector.extract_strided_slice %25 {offsets = [0, 128], sizes = [16, 128], strides = [1, 1]} : vector<16x384xf32> to vector<16x128xf32>
    %28 = vector.extract_strided_slice %25 {offsets = [0, 256], sizes = [16, 128], strides = [1, 1]} : vector<16x384xf32> to vector<16x128xf32>
    %29 = vector.extract_strided_slice %27 {offsets = [0, 0], sizes = [8, 128], strides = [1, 1]} : vector<16x128xf32> to vector<8x128xf32>
    %30 = vector.extract_strided_slice %27 {offsets = [8, 0], sizes = [8, 128], strides = [1, 1]} : vector<16x128xf32> to vector<8x128xf32>
    %31 = arith.subf %29, %30 : vector<8x128xf32>
    %c64_i32 = arith.constant 64 : i32
    %32 = tpu.dynamic_rotate %31 by %c64_i32 dim 1 : vector<8x128xf32>, i32 -> vector<8x128xf32>
    %33 = tpu.concatenate %32, %32 in 0 : vector<8x128xf32>, vector<8x128xf32> -> vector<16x128xf32>
    %34 = arith.mulf %26, %33 : vector<16x128xf32>
    %35 = arith.truncf %34 : vector<16x128xf32> to vector<16x128xbf16>
    %c0_12 = arith.constant 0 : index
    %c0_13 = arith.constant 0 : index
    %36 = vector.load %arg5[%c0_12, %c0_13] : memref<128x128xbf16, #tpu.memory_space<vmem>>, vector<128x128xbf16>
    %cst_14 = arith.constant dense<0.000000e+00> : vector<16x128xf32>
    %37 = tpu.matmul %35, %36, %cst_14 {dimension_numbers = #tpu.dot_dimension_numbers<[1], [0], [0], [1], [0, 0, 1, 1], [], []>} : vector<16x128xbf16>, vector<128x128xbf16>, vector<16x128xf32> -> vector<16x128xf32>
    %38 = math.absf %37 : vector<16x128xf32>
    %cst_15 = arith.constant 0.000000e+00 : f32
    %39 = vector.broadcast %cst_15 : f32 to vector<16x128xf32>
    %40 = arith.subf %39, %38 : vector<16x128xf32>
    %41 = math.exp %40 : vector<16x128xf32>
    %cst_16 = arith.constant 1.000000e+00 : f32
    %42 = vector.broadcast %cst_16 : f32 to vector<16x128xf32>
    %43 = arith.addf %42, %41 : vector<16x128xf32>
    %44 = tpu.reciprocal %43 {approx = true} : vector<16x128xf32> -> vector<16x128xf32>
    %cst_17 = arith.constant 0.000000e+00 : f32
    %45 = vector.broadcast %cst_17 : f32 to vector<16x128xf32>
    %46 = arith.cmpf oge, %37, %45 : vector<16x128xf32>
    %47 = arith.mulf %41, %44 : vector<16x128xf32>
    %48 = arith.select %46, %44, %47 : vector<16x128xi1>, vector<16x128xf32>
    %49 = vector.extract_strided_slice %48 {offsets = [0, 0], sizes = [8, 128], strides = [1, 1]} : vector<16x128xf32> to vector<8x128xf32>
    %50 = vector.extract_strided_slice %48 {offsets = [8, 0], sizes = [8, 128], strides = [1, 1]} : vector<16x128xf32> to vector<8x128xf32>
    %51 = arith.addf %49, %50 : vector<8x128xf32>
    %52 = vector.extract_strided_slice %28 {offsets = [0, 0], sizes = [8, 128], strides = [1, 1]} : vector<16x128xf32> to vector<8x128xf32>
    %53 = vector.extract_strided_slice %28 {offsets = [8, 0], sizes = [8, 128], strides = [1, 1]} : vector<16x128xf32> to vector<8x128xf32>
    %54 = arith.subf %52, %53 : vector<8x128xf32>
    %c64_i32_18 = arith.constant 64 : i32
    %55 = tpu.dynamic_rotate %54 by %c64_i32_18 dim 1 : vector<8x128xf32>, i32 -> vector<8x128xf32>
    %56 = vector.extract_strided_slice %28 {offsets = [8, 0], sizes = [8, 128], strides = [1, 1]} : vector<16x128xf32> to vector<8x128xf32>
    %c64_i32_19 = arith.constant 64 : i32
    %57 = tpu.dynamic_rotate %56 by %c64_i32_19 dim 1 : vector<8x128xf32>, i32 -> vector<8x128xf32>
    %cst_20 = arith.constant 2.000000e+00 : f32
    %58 = vector.broadcast %cst_20 : f32 to vector<8x128xf32>
    %59 = arith.mulf %58, %57 : vector<8x128xf32>
    %60 = arith.mulf %51, %55 : vector<8x128xf32>
    %61 = arith.addf %59, %60 : vector<8x128xf32>
    %62 = arith.extf %1 : vector<8x128xbf16> to vector<8x128xf32>
    %63 = vector.extract_strided_slice %62 {offsets = [0, 0], sizes = [8, 64], strides = [1, 1]} : vector<8x128xf32> to vector<8x64xf32>
    %64 = vector.extract_strided_slice %62 {offsets = [0, 64], sizes = [8, 64], strides = [1, 1]} : vector<8x128xf32> to vector<8x64xf32>
    %65 = arith.mulf %63, %64 : vector<8x64xf32>
    %66 = vector.extract_strided_slice %18 {offsets = [0, 0], sizes = [8, 64], strides = [1, 1]} : vector<8x128xf32> to vector<8x64xf32>
    %67 = vector.extract_strided_slice %18 {offsets = [0, 64], sizes = [8, 64], strides = [1, 1]} : vector<8x128xf32> to vector<8x64xf32>
    %68 = arith.mulf %66, %67 : vector<8x64xf32>
    %69 = tpu.concatenate %65, %68, %61 in 1 : vector<8x64xf32>, vector<8x64xf32>, vector<8x128xf32> -> vector<8x256xf32>
    %70 = arith.truncf %69 : vector<8x256xf32> to vector<8x256xbf16>
    %c0_21 = arith.constant 0 : index
    %c0_22 = arith.constant 0 : index
    %71 = vector.load %arg6[%c0_21, %c0_22] : memref<256x128xbf16, #tpu.memory_space<vmem>>, vector<256x128xbf16>
    %cst_23 = arith.constant dense<0.000000e+00> : vector<8x128xf32>
    %72 = tpu.matmul %70, %71, %cst_23 {dimension_numbers = #tpu.dot_dimension_numbers<[1], [0], [0], [1], [0, 0, 1, 1], [], []>} : vector<8x256xbf16>, vector<256x128xbf16>, vector<8x128xf32> -> vector<8x128xf32>
    %73 = vector.extract_strided_slice %5 {offsets = [3, 0], sizes = [1, 128], strides = [1, 1]} : vector<8x384xf32> to vector<1x128xf32>
    %74 = vector.broadcast %73 : vector<1x128xf32> to vector<8x128xf32>
    %75 = arith.addf %72, %74 : vector<8x128xf32>
    %cst_24 = arith.constant 0.000000e+00 : f32
    %76 = vector.broadcast %cst_24 : f32 to vector<8x128xf32>
    %77 = arith.maximumf %75, %76 : vector<8x128xf32>
    %78 = arith.truncf %77 : vector<8x128xf32> to vector<8x128xbf16>
    %c0_25 = arith.constant 0 : index
    %c0_26 = arith.constant 0 : index
    %79 = vector.load %arg7[%c0_25, %c0_26] : memref<128x64xbf16, #tpu.memory_space<vmem>>, vector<128x64xbf16>
    %cst_27 = arith.constant dense<0.000000e+00> : vector<8x64xf32>
    %80 = tpu.matmul %78, %79, %cst_27 {dimension_numbers = #tpu.dot_dimension_numbers<[1], [0], [0], [1], [0, 0, 1, 1], [], []>} : vector<8x128xbf16>, vector<128x64xbf16>, vector<8x64xf32> -> vector<8x64xf32>
    %81 = vector.extract_strided_slice %5 {offsets = [4, 0], sizes = [1, 64], strides = [1, 1]} : vector<8x384xf32> to vector<1x64xf32>
    %82 = vector.broadcast %81 : vector<1x64xf32> to vector<8x64xf32>
    %83 = arith.addf %80, %82 : vector<8x64xf32>
    %cst_28 = arith.constant 0.000000e+00 : f32
    %84 = vector.broadcast %cst_28 : f32 to vector<8x64xf32>
    %85 = arith.maximumf %83, %84 : vector<8x64xf32>
    %86 = arith.truncf %85 : vector<8x64xf32> to vector<8x64xbf16>
    %c0_29 = arith.constant 0 : index
    %c0_30 = arith.constant 0 : index
    %87 = vector.load %arg8[%c0_29, %c0_30] : memref<64x1xbf16, #tpu.memory_space<vmem>>, vector<64x1xbf16>
    %cst_31 = arith.constant dense<0.000000e+00> : vector<8x1xf32>
    %88 = tpu.matmul %86, %87, %cst_31 {dimension_numbers = #tpu.dot_dimension_numbers<[1], [0], [0], [1], [0, 0, 1, 1], [], []>} : vector<8x64xbf16>, vector<64x1xbf16>, vector<8x1xf32> -> vector<8x1xf32>
    %89 = vector.extract_strided_slice %5 {offsets = [5, 0], sizes = [1, 1], strides = [1, 1]} : vector<8x384xf32> to vector<1x1xf32>
    %90 = vector.broadcast %89 : vector<1x1xf32> to vector<8x1xf32>
    %91 = arith.addf %88, %90 : vector<8x1xf32>
    %92 = arith.addf %91, %4 : vector<8x1xf32>
    %c0_32 = arith.constant 0 : index
    %c0_33 = arith.constant 0 : index
    %93 = vector.load %arg10[%c0_32, %c0_33] : memref<8x1xf32, #tpu.memory_space<vmem>>, vector<8x1xf32>
    tpu.vector_store %arg10[%c0_32, %c0_33], %92 {strides = array<i32>} : memref<8x1xf32, #tpu.memory_space<vmem>>, vector<8x1xf32>,
    return
  }
  func.func @transform_0(%arg0: i32) -> (i32, i32) {
    %c0_i32 = arith.constant 0 : i32
    %c0_i32_0 = arith.constant 0 : i32
    return %arg0, %c0_i32 : i32, i32
  }
  func.func @transform_1(%arg0: i32) -> (i32, i32) {
    %c0_i32 = arith.constant 0 : i32
    %c0_i32_0 = arith.constant 0 : i32
    %c0_i32_1 = arith.constant 0 : i32
    return %c0_i32, %c0_i32_0 : i32, i32
  }
  func.func @transform_2(%arg0: i32) -> (i32, i32) {
    %c0_i32 = arith.constant 0 : i32
    %c0_i32_0 = arith.constant 0 : i32
    %c0_i32_1 = arith.constant 0 : i32
    return %c0_i32, %c0_i32_0 : i32, i32
  }
  func.func @transform_3(%arg0: i32) -> (i32, i32) {
    %c0_i32 = arith.constant 0 : i32
    %c0_i32_0 = arith.constant 0 : i32
    %c0_i32_1 = arith.constant 0 : i32
    return %c0_i32, %c0_i32_0 : i32, i32
  }
  func.func @transform_4(%arg0: i32) -> (i32, i32) {
    %c0_i32 = arith.constant 0 : i32
    %c0_i32_0 = arith.constant 0 : i32
    %c0_i32_1 = arith.constant 0 : i32
    return %c0_i32, %c0_i32_0 : i32, i32
  }
  func.func @transform_5(%arg0: i32) -> (i32, i32) {
    %c0_i32 = arith.constant 0 : i32
    %c0_i32_0 = arith.constant 0 : i32
    %c0_i32_1 = arith.constant 0 : i32
    return %c0_i32, %c0_i32_0 : i32, i32
  }
  func.func @transform_6(%arg0: i32) -> (i32, i32) {
    %c0_i32 = arith.constant 0 : i32
    %c0_i32_0 = arith.constant 0 : i32
    %c0_i32_1 = arith.constant 0 : i32
    return %c0_i32, %c0_i32_0 : i32, i32
  }
  func.func @transform_7(%arg0: i32) -> (i32, i32) {
    %c0_i32 = arith.constant 0 : i32
    %c0_i32_0 = arith.constant 0 : i32
    %c0_i32_1 = arith.constant 0 : i32
    return %c0_i32, %c0_i32_0 : i32, i32
  }
  func.func @transform_8(%arg0: i32) -> (i32, i32) {
    %c0_i32 = arith.constant 0 : i32
    %c0_i32_0 = arith.constant 0 : i32
    %c0_i32_1 = arith.constant 0 : i32
    return %c0_i32, %c0_i32_0 : i32, i32
  }
  func.func @transform_9(%arg0: i32) -> (i32, i32) {
    %c0_i32 = arith.constant 0 : i32
    %c0_i32_0 = arith.constant 0 : i32
    return %arg0, %c0_i32 : i32, i32
  }
}

</mosaic_0001>

<bundles_post_ra>
// kernel: hybrid_net_forward.1
= control target key start
LH: loop header
LB: loop body
LE: loop exit
PB: predicated region body
PF: predicated region fallthrough
CT: control target
= control target key end

     0   :  { %v1365_v0 = vmov 0.0   ;;  %vm1366_vm0 = vmmov 0   ;;  %vm81_vm1 = vcmask 523264   ;;  %v51_v27 = vlaneseq  ;;  %s1738_s1 = inlined_call_operand.vmem [shape: bf16[64,128], index: 1, kind: input, shape index: {}]   ;;  %s1739_s2 = inlined_call_operand.vmem [shape: bf16[128,128], index: 2, kind: input, shape index: {}]   ;;  %s1740_s0 = inlined_call_operand.vmem [shape: bf16[8,256], index: 0, kind: input, shape index: {}]   ;;  %s1741_s3 = inlined_call_operand.vmem [shape: bf16[128,384], index: 3, kind: input, shape index: {}]   ;;  %s1742_s8 = inlined_call_operand.vmem [shape: f32[8,384], index: 8, kind: input, shape index: {}]   ;;  %s1743_s4 = inlined_call_operand.vmem [shape: bf16[128,128], index: 4, kind: input, shape index: {}]   ;;  %s1744_s5 = inlined_call_operand.vmem [shape: bf16[256,128], index: 5, kind: input, shape index: {}]   ;;  %s1745_s6 = inlined_call_operand.vmem [shape: bf16[128,64], index: 6, kind: input, shape index: {}]   ;;  %s1746_s7 = inlined_call_operand.vmem [shape: bf16[64,1], index: 7, kind: input, shape index: {}]   ;;  %s1747_s9 = inlined_call_operand.vmem [shape: f32[8,1], index: 9, kind: output, shape index: {}]  }
   0x1   :  { %1168 = vmatprep.subr.bf16.mxu0 %v1365_v0  ;;  %v1276_v1 = vld [vmem:[%s1738_s1 + $0x18] sm:$0xff]   ;;  %1176 = vmatprep.mubr.msk.bf16.mxu0 %vm1366_vm0, %v1365_v0  ;;  %v1277_v2 = vld [vmem:[%s1738_s1 + $0x10] sm:$0xff]   ;;  %v1278_v4 = vld [vmem:[%s1738_s1 + $0x8] sm:$0xff]   ;;  %v1367_v51 = vmov 0   ;;  %vm238_vm2 = vcmask 1043456   ;;  %vm1019_vm5 = vcmask 7168  }
   0x2   :  { %1180 = vmatprep.subr.bf16.mxu1 %v1365_v0  ;;  %1196 = vmatprep.mubr.msk.bf16.mxu1 %vm1366_vm0, %v1365_v0  ;;  %v1281_v3 = vld [vmem:[%s1739_s2 + $0x38] sm:$0xff]   ;;  %v1282_v5 = vld [vmem:[%s1739_s2 + $0x30] sm:$0xff]   ;;  %v1279_v6 = vld [vmem:[%s1738_s1] sm:$0xff]   ;;  %v1516_v28 = vshrl.u32 %v51_v27, 7 }
   0x3   :  { %1169 = vmatpush3.bf16.msra.mxu0 %v1276_v1  ;;  %1181 = vmatpush3.bf16.msra.mxu1 %v1281_v3  ;;  %v1449_v7 = vld [vmem:[%s1740_s0] sm:$0xff]  ;;  %v1283_v8 = vld [vmem:[%s1739_s2 + $0x28] sm:$0xff]   ;;  %v1285_v11 = vld [vmem:[%s1739_s2 + $0x18] sm:$0xff]  }
   0x4   :  { %1170 = vmatprep.subr.bf16.mxu0 %v1365_v0  ;;  %1182 = vmatprep.subr.bf16.mxu1 %v1365_v0  ;;  %v1025_v9 = vcombine.high %v1449_v7, %v1449_v7  ;;  %v1284_v10 = vld [vmem:[%s1739_s2 + $0x20] sm:$0xff]   ;;  %v1286_v12 = vld [vmem:[%s1739_s2 + $0x10] sm:$0xff]   ;;  %v1287_v13 = vld [vmem:[%s1739_s2 + $0x8] sm:$0xff]   ;;  %v53_v29 = vsub.s32 0, %v1516_v28  ;;  %v145_v52 = vsub.s32 1, %v1516_v28  ;;  %v637_v27 = vunpack.c.l.bf16 %v1449_v7 }
   0x5   :  { %v1288_v14 = vld [vmem:[%s1739_s2] sm:$0xff]   ;;  %v1289_v15 = vld [vmem:[%s1741_s3 + $0xa8] ss:$12 sps:$4 sm:$0xff]   ;;  %v1291_v16 = vld [vmem:[%s1741_s3 + $0xac] ss:$12 sps:$4 sm:$0xff]  }
   0x6   :  { %v1295_v17 = vld [vmem:[%s1741_s3 + $0x94] ss:$12 sps:$4 sm:$0xff]   ;;  %v1293_v18 = vld [vmem:[%s1741_s3 + $0x90] ss:$12 sps:$4 sm:$0xff]   ;;  %v1297_v20 = vld [vmem:[%s1741_s3 + $0x78] ss:$12 sps:$4 sm:$0xff]  }
   0x7   :  { %1171 = vmatpush3.bf16.msra.mxu0 %v1277_v2  ;;  %1183 = vmatpush3.bf16.msra.mxu1 %v1282_v5  ;;  %v1299_v19 = vld [vmem:[%s1741_s3 + $0x7c] ss:$12 sps:$4 sm:$0xff]   ;;  %v1303_v21 = vld [vmem:[%s1741_s3 + $0x64] ss:$12 sps:$4 sm:$0xff]   ;;  %v1301_v22 = vld [vmem:[%s1741_s3 + $0x60] ss:$12 sps:$4 sm:$0xff]  }
   0x8   :  { %1172 = vmatprep.subr.bf16.mxu0 %v1365_v0  ;;  %1184 = vmatprep.subr.bf16.mxu1 %v1365_v0  ;;  %v1307_v23 = vld [vmem:[%s1741_s3 + $0x4c] ss:$12 sps:$4 sm:$0xff]   ;;  %v1305_v24 = vld [vmem:[%s1741_s3 + $0x48] ss:$12 sps:$4 sm:$0xff]   ;;  %v1309_v26 = vld [vmem:[%s1741_s3 + $0x30] ss:$12 sps:$4 sm:$0xff]  }
   0x9   :  { %v1311_v25 = vld [vmem:[%s1741_s3 + $0x34] ss:$12 sps:$4 sm:$0xff]   ;;  %v1292_v37 = vld [vmem:[%s1741_s3 + $0xb0] ss:$12 sps:$4 sm:$0xff]   ;;  %v1296_v40 = vld [vmem:[%s1741_s3 + $0x98] ss:$12 sps:$4 sm:$0xff]  }
   0xa   :  { %v1522_v30 = vld [vmem:[%s1742_s8] sm:$0xff]  ;;  %v1304_v42 = vld [vmem:[%s1741_s3 + $0x68] ss:$12 sps:$4 sm:$0xff]   ;;  %v1308_v43 = vld [vmem:[%s1741_s3 + $0x50] ss:$12 sps:$4 sm:$0xff]  }
   0xb   :  { %1173 = vmatpush3.bf16.msra.mxu0 %v1278_v4  ;;  %1185 = vmatpush3.bf16.msra.mxu1 %v1283_v8  ;;  %v54_v31 = vrot.slane %v1522_v30, %v53_v29  ;;  %v1300_v41 = vld [vmem:[%s1741_s3 + $0x80] ss:$12 sps:$4 sm:$0xff]   ;;  %v1312_v44 = vld [vmem:[%s1741_s3 + $0x38] ss:$12 sps:$4 sm:$0xff]   ;;  %v1315_v45 = vld [vmem:[%s1741_s3 + $0x1c] ss:$12 sps:$4 sm:$0xff]   ;;  %v146_v53 = vrot.slane %v1522_v30, %v145_v52 }
   0xc   :  { %1174 = vmatprep.subr.bf16.mxu0 %v1365_v0  ;;  %1186 = vmatprep.subr.bf16.mxu1 %v1365_v0  ;;  %v1313_v46 = vld [vmem:[%s1741_s3 + $0x18] ss:$12 sps:$4 sm:$0xff]   ;;  %v1316_v47 = vld [vmem:[%s1741_s3 + $0x20] ss:$12 sps:$4 sm:$0xff]   ;;  %v1320_v50 = vld [vmem:[%s1741_s3 + $0x8] ss:$12 sps:$4 sm:$0xff]  }
   0xd   :  { %v1319_v48 = vld [vmem:[%s1741_s3 + $0x4] ss:$12 sps:$4 sm:$0xff]   ;;  %v1317_v49 = vld [vmem:[%s1741_s3] ss:$12 sps:$4 sm:$0xff]   ;;  %v1321_v62 = vld [vmem:[%s1743_s4 + $0x38] sm:$0xff]  }
   0xe   :  { %v1322_v63 = vld [vmem:[%s1743_s4 + $0x30] sm:$0xff]   ;;  %v1323_v1 = vld [vmem:[%s1743_s4 + $0x28] sm:$0xff]   ;;  %v1324_v2 = vld [vmem:[%s1743_s4 + $0x20] sm:$0xff]  }
   0xf   :  { %1175 = vmatpush3.bf16.msra.mxu0 %v1279_v6  ;;  %1187 = vmatpush3.bf16.msra.mxu1 %v1284_v10  ;;  %v1325_v3 = vld [vmem:[%s1743_s4 + $0x18] sm:$0xff]   ;;  %v1326_v4 = vld [vmem:[%s1743_s4 + $0x10] sm:$0xff]   ;;  %v1327_v5 = vld [vmem:[%s1743_s4 + $0x8] sm:$0xff]   ;;  %v277_v6 = vsub.s32 2, %v1516_v28 }
  0x10   :  { %1188 = vmatprep.subr.bf16.mxu1 %v1365_v0  ;;  %415 = vmatprep.subr.bf16.mxu0 %v1291_v16  ;;  %v1328_v8 = vld [vmem:[%s1743_s4] sm:$0xff]   ;;  %s1368_s4 = smov 64   ;;  %v1342_v52 = vld [vmem:[%s1744_s5 + $0x8] sm:$0xff]  }
  0x11   :  { %v278_v29 = vrot.slane %v1522_v30, %v277_v6 }
  0x12   :  { %1177 = vmatmul.mubr.msk.bf16.vlgmr.msra.gmra.mxu0 %vm81_vm1, %v1025_v9  ;;  %v42_v9 = vld [vmem:[%s1742_s8 + $0x10] sm:$0xff] }
  0x13   :  { %1189 = vmatpush3.bf16.msra.mxu1 %v1285_v11  ;;  %416 = vmatpush1.bf16.msra.mxu0 %v1289_v15 }
  0x14   :  { %1190 = vmatprep.subr.bf16.mxu1 %v1365_v0  ;;  %417 = vmatprep.subr.bf16.mxu0 %v1295_v17 }
  0x15   :  { %447 = vmatprep.mubr.bf16.mxu0 %v1367_v51  ;;  %v1341_v51 = vld [vmem:[%s1744_s5 + $0x48] sm:$0xff]  }
  0x17   :  { %1191 = vmatpush3.bf16.msra.mxu1 %v1286_v12  ;;  %418 = vmatpush1.bf16.msra.mxu0 %v1293_v18  ;;  %v41_v12 = vld [vmem:[%s1742_s8 + $0x8] sm:$0xff] }
  0x18   :  { %1192 = vmatprep.subr.bf16.mxu1 %v1365_v0  ;;  %419 = vmatprep.subr.bf16.mxu0 %v1299_v19  ;;  %v282_v16 = vrot.slane %v41_v12, %v277_v6 }
  0x1b   :  { %1193 = vmatpush3.bf16.msra.mxu1 %v1287_v13  ;;  %420 = vmatpush1.bf16.msra.mxu0 %v1297_v20  ;;  %v286_v13 = vrot.slane %v42_v9, %v277_v6 }
  0x1c   :  { %1194 = vmatprep.subr.bf16.mxu1 %v1365_v0  ;;  %421 = vmatprep.subr.bf16.mxu0 %v1303_v21 }
  0x1f   :  { %1195 = vmatpush3.bf16.msra.mxu1 %v1288_v14  ;;  %422 = vmatpush1.bf16.msra.mxu0 %v1301_v22 }
  0x20   :  { %1200 = vmatprep.subr.bf16.mxu1 %v1365_v0  ;;  %423 = vmatprep.subr.bf16.mxu0 %v1307_v23 }
  0x23   :  { %424 = vmatpush1.bf16.msra.mxu0 %v1305_v24 }
  0x24   :  { %425 = vmatprep.subr.bf16.mxu0 %v1311_v25 }
  0x27   :  { %426 = vmatpush1.bf16.msra.mxu0 %v1309_v26 }
  0x28   :  { %427 = vmatprep.subr.bf16.mxu0 %v1315_v45  ;;  %v1335_v45 = vld [vmem:[%s1744_s5 + $0x60] sm:$0xff]  }
  0x2b   :  { %428 = vmatpush1.bf16.msra.mxu0 %v1313_v46  ;;  %v1336_v46 = vld [vmem:[%s1744_s5 + $0x20] sm:$0xff]  }
  0x2c   :  { %429 = vmatprep.subr.bf16.mxu0 %v1319_v48  ;;  %v1338_v48 = vld [vmem:[%s1744_s5 + $0x18] sm:$0xff]  }
  0x2f   :  { %430 = vmatpush1.bf16.msra.mxu0 %v1317_v49  ;;  %v1339_v49 = vld [vmem:[%s1744_s5 + $0x50] sm:$0xff]  }
  0x30   :  { %1220 = vmatprep.subr.bf16.mxu0 %v1365_v0 }
  0xd2   :  { %v119_v32 = vpop.f32.mrf.mxu0 }
  0xd3   :  { %v120_v33 = vadd.f32 %v119_v32, %v54_v31 }
  0xd4   :  { %v1178_v34 = vpop.f32.mrf.mxu0 }
  0xd5   :  { %v125_v35 = vmax.f32 %v120_v33, 0.0 }
  0xd6   :  { %v122_v36 = vpop.f32.mrf.mxu0 }
  0xd7   :  { %v126_v38 = vpack.c.bf16 %v125_v35, %v125_v35 }
  0xd8   :  { %v1179_v39 = vpop.f32.mrf.mxu0 }
  0xd9   :  { %1197 = vmatmul.mubr.bf16.vlgmr.msra.gmra.mxu1 %v126_v38  ;;  %v1329_v39 = vld [vmem:[%s1744_s5 + $0x78] sm:$0xff]  }
  0xda   :  { %1201 = vmatpush3.bf16.msra.mxu1 %v1292_v37  ;;  %1216 = vmatprep.mubr.msk.bf16.mxu1 %vm1366_vm0, %v1365_v0 }
  0xdb   :  { %1202 = vmatprep.subr.bf16.mxu1 %v1365_v0 }
  0xde   :  { %1203 = vmatpush3.bf16.msra.mxu1 %v1296_v40  ;;  %v1330_v40 = vld [vmem:[%s1744_s5 + $0x38] sm:$0xff]  }
  0xdf   :  { %1204 = vmatprep.subr.bf16.mxu1 %v1365_v0 }
  0xe2   :  { %1205 = vmatpush3.bf16.msra.mxu1 %v1300_v41  ;;  %v1331_v41 = vld [vmem:[%s1744_s5 + $0x70] sm:$0xff]  }
  0xe3   :  { %1206 = vmatprep.subr.bf16.mxu1 %v1365_v0 }
  0xe6   :  { %1207 = vmatpush3.bf16.msra.mxu1 %v1304_v42  ;;  %v1332_v42 = vld [vmem:[%s1744_s5 + $0x30] sm:$0xff]  }
  0xe7   :  { %1208 = vmatprep.subr.bf16.mxu1 %v1365_v0 }
  0xea   :  { %1209 = vmatpush3.bf16.msra.mxu1 %v1308_v43  ;;  %v1333_v43 = vld [vmem:[%s1744_s5 + $0x68] sm:$0xff]  }
  0xeb   :  { %1210 = vmatprep.subr.bf16.mxu1 %v1365_v0 }
  0xee   :  { %1211 = vmatpush3.bf16.msra.mxu1 %v1312_v44  ;;  %v1334_v44 = vld [vmem:[%s1744_s5 + $0x28] sm:$0xff]  }
  0xef   :  { %1212 = vmatprep.subr.bf16.mxu1 %v1365_v0 }
  0xf2   :  { %1213 = vmatpush3.bf16.msra.mxu1 %v1316_v47  ;;  %v1337_v47 = vld [vmem:[%s1744_s5 + $0x58] sm:$0xff]  }
  0xf3   :  { %1214 = vmatprep.subr.bf16.mxu1 %v1365_v0 }
  0xf6   :  { %1215 = vmatpush3.bf16.msra.mxu1 %v1320_v50  ;;  %v1340_v50 = vld [vmem:[%s1744_s5 + $0x10] sm:$0xff]  }
  0xf7   :  { %1132 = vmatprep.subr.bf16.mxu1 %v1329_v39 }
 0x199   :  { %v229_v54 = vpop.f32.mrf.mxu1 }
 0x19a   :  { %v1573_v55 = vadd.f32 %v229_v54, %v146_v53  ;;  %v1343_v53 = vld [vmem:[%s1744_s5 + $0x40] sm:$0xff]  }
 0x19b   :  { %v1198_v56 = vpop.f32.mrf.mxu1  ;;  %v1344_v54 = vld [vmem:[%s1744_s5] sm:$0xff]  }
 0x19c   :  { %v235_v57 = vpack.c.bf16 %v1573_v55, %v1573_v55  ;;  %v1346_v56 = vld [vmem:[%s1745_s6 + $0x30] sm:$0xff]  }
 0x19d   :  { %v232_v58 = vpop.f32.mrf.mxu1 }
 0x19e   :  { %v237_v59 = vrot.slane %v235_v57, 4  ;;  %v1347_v57 = vld [vmem:[%s1745_s6 + $0x28] sm:$0xff]   ;;  %v1348_v58 = vld [vmem:[%s1745_s6 + $0x20] sm:$0xff]  }
 0x19f   :  { %v1199_v60 = vpop.f32.mrf.mxu1 }
 0x1a0   :  { %v241_v61 = vsel %vm238_vm2, %v1449_v7, %v237_v59  ;;  %v1349_v59 = vld [vmem:[%s1745_s6 + $0x18] sm:$0xff]  }
 0x1a1   :  { %448 = vmatmul.mubr.bf16.vlgmr.msra.gmra.mxu0 %v241_v61  ;;  %1217 = vmatmul.mubr.bf16.vlgmr.msra.gmra.mxu1 %v241_v61 }
 0x1a2   :  { %1236 = vmatprep.mubr.msk.bf16.mxu0 %vm1366_vm0, %v1365_v0  ;;  %1221 = vmatpush3.bf16.msra.mxu0 %v1321_v62 }
 0x1a3   :  { %1222 = vmatprep.subr.bf16.mxu0 %v1365_v0  ;;  %1133 = vmatpush3.bf16.msra.mxu1 %v1330_v40 }
 0x1a4   :  { %1134 = vmatprep.subr.bf16.mxu1 %v1331_v41 }
 0x1a6   :  { %1223 = vmatpush3.bf16.msra.mxu0 %v1322_v63 }
 0x1a7   :  { %1224 = vmatprep.subr.bf16.mxu0 %v1365_v0  ;;  %1135 = vmatpush3.bf16.msra.mxu1 %v1332_v42 }
 0x1a8   :  { %1136 = vmatprep.subr.bf16.mxu1 %v1333_v43 }
 0x1aa   :  { %1225 = vmatpush3.bf16.msra.mxu0 %v1323_v1 }
 0x1ab   :  { %1226 = vmatprep.subr.bf16.mxu0 %v1365_v0  ;;  %1137 = vmatpush3.bf16.msra.mxu1 %v1334_v44 }
 0x1ac   :  { %1138 = vmatprep.subr.bf16.mxu1 %v1335_v45 }
 0x1ae   :  { %1227 = vmatpush3.bf16.msra.mxu0 %v1324_v2 }
 0x1af   :  { %1228 = vmatprep.subr.bf16.mxu0 %v1365_v0  ;;  %1139 = vmatpush3.bf16.msra.mxu1 %v1336_v46  ;;  %v1355_v46 = vld [vmem:[%s1746_s7 + $0x8] sm:$0xff]  }
 0x1b0   :  { %1140 = vmatprep.subr.bf16.mxu1 %v1337_v47  ;;  %v1356_v47 = vld [vmem:[%s1746_s7] sm:$0xff]  }
 0x1b2   :  { %1229 = vmatpush3.bf16.msra.mxu0 %v1325_v3 }
 0x1b3   :  { %1230 = vmatprep.subr.bf16.mxu0 %v1365_v0  ;;  %1141 = vmatpush3.bf16.msra.mxu1 %v1338_v48  ;;  %v847_v48 = vsub.s32 4, %v1516_v28 }
 0x1b4   :  { %1142 = vmatprep.subr.bf16.mxu1 %v1339_v49 }
 0x1b5   :  { %v848_v49 = vrot.slane %v1522_v30, %v847_v48 }
 0x1b6   :  { %1231 = vmatpush3.bf16.msra.mxu0 %v1326_v4 }
 0x1b7   :  { %1232 = vmatprep.subr.bf16.mxu0 %v1365_v0  ;;  %1143 = vmatpush3.bf16.msra.mxu1 %v1340_v50 }
 0x1b8   :  { %1144 = vmatprep.subr.bf16.mxu1 %v1341_v51 }
 0x1ba   :  { %1233 = vmatpush3.bf16.msra.mxu0 %v1327_v5 }
 0x1bb   :  { %1234 = vmatprep.subr.bf16.mxu0 %v1365_v0  ;;  %1145 = vmatpush3.bf16.msra.mxu1 %v1342_v52 }
 0x1bc   :  { %1146 = vmatprep.subr.bf16.mxu1 %v1343_v53 }
 0x1be   :  { %1235 = vmatpush3.bf16.msra.mxu0 %v1328_v8 }
 0x1bf   :  { %1240 = vmatprep.subr.bf16.mxu0 %v1365_v0  ;;  %1147 = vmatpush3.bf16.msra.mxu1 %v1344_v54 }
 0x1c0   :  { %1260 = vmatprep.subr.bf16.mxu1 %v1365_v0 }
 0x261   :  { %v449_v10 = vpop.f32.mrf.mxu0  ;;  %v492_v11 = vpop.f32.mrf.mxu1 }
 0x262   :  { %v493_v19 = vadd.f32 %v492_v11, %v286_v13  ;;  %v450_v31 = vadd.f32 %v449_v10, %v278_v29 }
 0x263   :  { %v451_v14 = vpop.f32.mrf.mxu0  ;;  %v1218_v15 = vpop.f32.mrf.mxu1 }
 0x264   :  { %v452_v23 = vadd.f32 %v451_v14, %v282_v16 }
 0x265   :  { %v453_v17 = vpop.f32.mrf.mxu0  ;;  %v495_v18 = vpop.f32.mrf.mxu1 }
 0x266   :  { %v496_v20 = vadd.f32 %v495_v18, %v286_v13  ;;  %v454_v32 = vadd.f32 %v453_v17, %v278_v29 }
 0x267   :  { %v455_v21 = vpop.f32.mrf.mxu0  ;;  %v1219_v22 = vpop.f32.mrf.mxu1 }
 0x268   :  { %v456_v24 = vadd.f32 %v455_v21, %v282_v16  ;;  %v629_v25 = vsub.f32 %v493_v19, %v496_v20 }
 0x26a   :  { %630 = vrot.lane.b32.xlu1 %v629_v25, %s1368_s4  ;;  %v499_v26 = vsub.f32 %v452_v23, %v456_v24 }
 0x26c   :  { %500 = vrot.lane.b32.xlu0 %v499_v26, %s1368_s4 }
 0x26e   :  { %632 = vrot.lane.b32.xlu1 %v496_v20, %s1368_s4 }
 0x270   :  { %644 = vrot.lane.b32.xlu0 %v1573_v55, %s1368_s4 }
 0x274   :  { %639 = vrot.lane.b32.xlu0 %v637_v27, %s1368_s4 }
 0x278   :  { %35 = vrot.lane.b32.xlu0 %v1449_v7, %s1368_s4  ;;  %v1351_v7 = vld [vmem:[%s1745_s6 + $0x8] sm:$0xff]  }
 0x2dc   :  { %v631_v12 = vpop.permute.xlu1 %630 }
 0x2de   :  { %v501_v33 = vpop.permute.xlu0 %500 }
 0x2df   :  { %v502_v34 = vmul.f32 %v501_v33, %v450_v31  ;;  %v503_v35 = vmul.f32 %v501_v33, %v454_v32  ;;  %v1350_v33 = vld [vmem:[%s1745_s6 + $0x10] sm:$0xff]  }
 0x2e0   :  { %v633_v16 = vpop.permute.xlu1 %632 }
 0x2e1   :  { %v504_v36 = vpack.c.bf16 %v503_v35, %v502_v34  ;;  %v634_v24 = vmul.f32 2.0, %v633_v16  ;;  %v1353_v34 = vld [vmem:[%s1746_s7 + $0x18] sm:$0xff]   ;;  %v1354_v35 = vld [vmem:[%s1746_s7 + $0x10] sm:$0xff]  }
 0x2e2   :  { %v645_v37 = vpop.permute.xlu0 %644 }
 0x2e3   :  { %v647_v38 = vmul.f32 %v645_v37, %v1573_v55  ;;  %1237 = vmatmul.mubr.bf16.vlgmr.msra.gmra.mxu0 %v504_v36  ;;  %v1345_v55 = vld [vmem:[%s1745_s6 + $0x38] sm:$0xff]   ;;  %v689_v36 = vsub.s32 3, %v1516_v28 }
 0x2e4   :  { %1256 = vmatprep.mubr.msk.bf16.mxu0 %vm1366_vm0, %v1365_v0  ;;  %1241 = vmatpush3.bf16.msra.mxu0 %v1345_v55 }
 0x2e5   :  { %649 = vrot.lane.b32.xlu1 %v647_v38, %s1368_s4  ;;  %1242 = vmatprep.subr.bf16.mxu0 %v1365_v0  ;;  %v690_v38 = vrot.slane %v1522_v30, %v689_v36 }
 0x2e6   :  { %v640_v17 = vpop.permute.xlu0 %639 }
 0x2e7   :  { %v642_v21 = vmul.f32 %v640_v17, %v637_v27  ;;  %v1352_v27 = vld [vmem:[%s1745_s6] sm:$0xff]  }
 0x2e8   :  { %1243 = vmatpush3.bf16.msra.mxu0 %v1346_v56 }
 0x2e9   :  { %1244 = vmatprep.subr.bf16.mxu0 %v1365_v0 }
 0x2ec   :  { %1245 = vmatpush3.bf16.msra.mxu0 %v1347_v57  ;;  %v36_v57 = vpop.permute.xlu0 %35 }
 0x2ed   :  { %1246 = vmatprep.subr.bf16.mxu0 %v1365_v0 }
 0x2f0   :  { %1247 = vmatpush3.bf16.msra.mxu0 %v1348_v58  ;;  %v37_v58 = vrot.slane %v36_v57, 4 }
 0x2f1   :  { %1248 = vmatprep.subr.bf16.mxu0 %v1365_v0 }
 0x2f4   :  { %1249 = vmatpush3.bf16.msra.mxu0 %v1349_v59 }
 0x2f5   :  { %1250 = vmatprep.subr.bf16.mxu0 %v1365_v0 }
 0x2f8   :  { %1251 = vmatpush3.bf16.msra.mxu0 %v1350_v33 }
 0x2f9   :  { %1252 = vmatprep.subr.bf16.mxu0 %v1365_v0 }
 0x2fc   :  { %1253 = vmatpush3.bf16.msra.mxu0 %v1351_v7 }
 0x2fd   :  { %1254 = vmatprep.subr.bf16.mxu0 %v1365_v0 }
 0x300   :  { %1255 = vmatpush3.bf16.msra.mxu0 %v1352_v27 }
 0x357   :  { %v650_v23 = vpop.permute.xlu1 %649 }
 0x358   :  { %v652_v26 = vsel %vm81_vm1, %v642_v21, %v650_v23 }
 0x359   :  { %v653_v32 = vpack.c.bf16 %v652_v26, %v652_v26 }
 0x3a3   :  { %v603_v60 = vpop.f32.mrf.mxu0 }
 0x3a4   :  { %v610_v61 = vand.u32 2147483647, %v603_v60  ;;  %vm622_vm3 = vcmp.ge.f32.partialorder %v603_v60, 0.0  ;;  %v39_v60 = vunpack.c.l.bf16 %v37_v58 }
 0x3a5   :  { %v1238_v62 = vpop.f32.mrf.mxu0 }
 0x3a6   :  { %v612_v63 = vsub.f32 0.0, %v610_v61 }
 0x3a7   :  { %v606_v1 = vpop.f32.mrf.mxu0 }
 0x3a8   :  { %v614_v2 = vmul.f32 1.442695, %v612_v63  ;;  %v611_v3 = vand.u32 2147483647, %v606_v1  ;;  %vm623_vm4 = vcmp.ge.f32.partialorder %v606_v1, 0.0 }
 0x3a9   :  { %v1239_v4 = vpop.f32.mrf.mxu0 }
 0x3aa   :  { %1357 = vpow2.f32 %v614_v2  ;;  %v613_v5 = vsub.f32 0.0, %v611_v3 }
 0x3ac   :  { %v616_v6 = vmul.f32 1.442695, %v613_v5 }
 0x3ae   :  { %1359 = vpow2.f32 %v616_v6 }
 0x3b7   :  { %v1358_v8 = vpop.eup %1357 }
 0x3b8   :  { %v618_v9 = vadd.f32 1.0, %v1358_v8 }
 0x3ba   :  { %1361 = vrcp.f32 %v618_v9 }
 0x3bb   :  { %v1360_v10 = vpop.eup %1359 }
 0x3bc   :  { %v619_v11 = vadd.f32 1.0, %v1360_v10 }
 0x3be   :  { %1363 = vrcp.f32 %v619_v11 }
 0x3c7   :  { %v1362_v13 = vpop.eup %1361 }
 0x3c8   :  { %v624_v14 = vmul.f32 %v1362_v13, %v1358_v8 }
 0x3ca   :  { %v626_v19 = vsel %vm622_vm3, %v1362_v13, %v624_v14 }
 0x3cb   :  { %v1364_v15 = vpop.eup %1363 }
 0x3cc   :  { %v625_v18 = vmul.f32 %v1364_v15, %v1360_v10 }
 0x3ce   :  { %v627_v20 = vsel %vm623_vm4, %v1364_v15, %v625_v18 }
 0x3cf   :  { %v628_v22 = vadd.f32 %v627_v20, %v626_v19 }
 0x3d1   :  { %v635_v25 = vmul.f32 %v631_v12, %v628_v22 }
 0x3d3   :  { %v636_v29 = vadd.f32 %v635_v25, %v634_v24 }
 0x3d5   :  { %v654_v31 = vpack.c.bf16 %v636_v29, %v636_v29 }
 0x3d7   :  { %819 = vmatprep.mubr.bf16.mxu1 %v654_v31 }
 0x3d8   :  { %820 = vmatmul.mubr.bf16.vlgmr.msra.gmra.mxu1 %v653_v32 }
 0x3d9   :  { %1268 = vmatprep.mubr.msk.bf16.mxu1 %vm1366_vm0, %v1365_v0  ;;  %1261 = vmatpush3.bf16.msra.mxu1 %v1353_v34 }
 0x3da   :  { %1262 = vmatprep.subr.bf16.mxu1 %v1365_v0 }
 0x3dd   :  { %1263 = vmatpush3.bf16.msra.mxu1 %v1354_v35 }
 0x3de   :  { %1264 = vmatprep.subr.bf16.mxu1 %v1365_v0 }
 0x3e1   :  { %1265 = vmatpush3.bf16.msra.mxu1 %v1355_v46 }
 0x3e2   :  { %1266 = vmatprep.subr.bf16.mxu1 %v1365_v0  ;;  %v949_v0 = vsub.s32 5, %v1516_v28 }
 0x3e4   :  { %v950_v59 = vrot.slane %v1522_v30, %v949_v0 }
 0x3e5   :  { %1267 = vmatpush3.bf16.msra.mxu1 %v1356_v47 }
 0x498   :  { %v1148_v37 = vpop.f32.mrf.mxu1 }
 0x49a   :  { %v1149_v39 = vpop.f32.mrf.mxu1 }
 0x49b   :  { %v1150_v40 = vadd.f32 %v1149_v39, %v1148_v37 }
 0x49c   :  { %v1151_v41 = vpop.f32.mrf.mxu1 }
 0x49d   :  { %v822_v42 = vadd.f32 %v1150_v40, %v690_v38 }
 0x49e   :  { %v1152_v43 = vpop.f32.mrf.mxu1 }
 0x49f   :  { %v827_v44 = vmax.f32 %v822_v42, 0.0 }
 0x4a1   :  { %v828_v45 = vpack.c.bf16 %v827_v44, %v827_v44 }
 0x4a3   :  { %1257 = vmatmul.mubr.bf16.vlgmr.msra.gmra.mxu0 %v828_v45 }
 0x563   :  { %v931_v50 = vpop.f32.mrf.mxu0 }
 0x564   :  { %v932_v51 = vadd.f32 %v931_v50, %v848_v49 }
 0x565   :  { %v1258_v52 = vpop.f32.mrf.mxu0 }
 0x566   :  { %v937_v53 = vmax.f32 %v932_v51, 0.0 }
 0x567   :  { %v934_v54 = vpop.f32.mrf.mxu0 }
 0x568   :  { %v938_v55 = vpack.c.bf16 %v937_v53, %v937_v53 }
 0x569   :  { %v1259_v56 = vpop.f32.mrf.mxu0 }
 0x56a   :  { %1269 = vmatmul.mubr.msk.bf16.vlgmr.msra.gmra.mxu1 %vm81_vm1, %v938_v55 }
 0x62a   :  { %v1012_v61 = vpop.f32.mrf.mxu1 }
 0x62b   :  { %v1013_v62 = vadd.f32 %v1012_v61, %v950_v59 }
 0x62c   :  { %v1270_v63 = vpop.f32.mrf.mxu1 }
 0x62d   :  { %v1018_v1 = vadd.f32 %v1013_v62, %v39_v60 }
 0x62e   :  { %v1015_v2 = vpop.f32.mrf.mxu1 }
 0x62f   :  { %1020 = vst.msk [vmem:[%s1747_s9] sm:$0xff] %vm1019_vm5, %v1018_v1 }
 0x630   :  { %v1271_v3 = vpop.f32.mrf.mxu1 }

</bundles_post_ra>
